<compile_context>
chip_gen: v7x
topology: tpu7x:2x2x1
jax: 0.10.0
libtpu: 0.0.40
codegen_flags: <defaults>
</compile_context>

<pallas_src>
import functools

import jax
import jax.numpy as jnp
from jax.experimental import pallas as pl
from jax.experimental.pallas import tpu as pltpu

EPS = 1e-5


def _round_up(x: int, m: int) -> int:
    return ((x + m - 1) // m) * m


def dense_block_kernel(x_ref, w_ref, gamma_ref, beta_ref, o_ref):
    # x: (B, Fin_p)  resident across all Fout tiles
    # w: (TN, Fin_p) PyTorch (out, in) layout — contract on dim 1 of both
    # gamma/beta: (1, TN), o: (B, TN)
    x = x_ref[...]
    w = w_ref[...]

    # Linear (native dtype in, f32 accumulate on the MXU).  The Linear bias is
    # omitted: with training-mode BatchNorm right after, a per-feature constant
    # is exactly removed by the mean subtraction.
    y = jax.lax.dot_general(
        x, w,
        dimension_numbers=(((1,), (1,)), ((), ())),
        preferred_element_type=jnp.float32,
    )  # (B, TN) f32

    # BatchNorm1d, training mode: batch statistics, biased variance.
    mean = jnp.mean(y, axis=0, keepdims=True)          # (1, TN)
    yc = y - mean
    var = jnp.mean(yc * yc, axis=0, keepdims=True)     # (1, TN)

    # Fused affine: one full-tile multiply + one (1, TN) multiply.
    scale = gamma_ref[...].astype(jnp.float32) * jax.lax.rsqrt(var + EPS)
    out = yc * scale + beta_ref[...].astype(jnp.float32)

    # ReLU + cast at the final store only.
    o_ref[...] = jnp.maximum(out, 0.0).astype(o_ref.dtype)


@functools.partial(jax.jit, static_argnames=("tile_n",))
def dense_block(x, weight, bias, gamma, beta, *, tile_n=512):
    """Forward of DenseBlock (Linear -> BatchNorm1d(train) -> ReLU).

    x:      (B, Fin)
    weight: (Fout, Fin)   PyTorch nn.Linear layout (used as-is, no transpose)
    bias:   (Fout,)       unused — exactly cancelled by training-mode BN
    gamma:  (Fout,)       BN weight
    beta:   (Fout,)       BN bias
    """
    del bias  # cancelled exactly by the BN mean subtraction (see kernel)

    B, Fin = x.shape
    Fout = weight.shape[0]

    # Lane-dense padding: feature dims to multiples of 128.
    Fin_p = _round_up(Fin, 128)
    tn = min(_round_up(Fout, 128), _round_up(tile_n, 128))
    Fout_p = _round_up(Fout, tn)
    n_tiles = Fout_p // tn

    x_p = jnp.pad(x, ((0, 0), (0, Fin_p - Fin)))
    w_p = jnp.pad(weight, ((0, Fout_p - Fout), (0, Fin_p - Fin)))
    g_p = jnp.pad(gamma, (0, Fout_p - Fout)).reshape(1, Fout_p)
    b_p = jnp.pad(beta, (0, Fout_p - Fout)).reshape(1, Fout_p)

    # TODO(synk): for very large Fin add a K grid axis ("arbitrary") with an
    # f32 VMEM accumulator; for batch sizes where (B x tn) no longer fits VMEM,
    # switch to a two-pass sum / sum-of-squares scheme so BN stats stay
    # whole-batch correct.
    out = pl.pallas_call(
        dense_block_kernel,
        out_shape=jax.ShapeDtypeStruct((B, Fout_p), x.dtype),
        grid_spec=pltpu.PrefetchScalarGridSpec(
            num_scalar_prefetch=0,
            grid=(n_tiles,),
            in_specs=[
                pl.BlockSpec((B, Fin_p), lambda j: (0, 0)),   # x resident
                pl.BlockSpec((tn, Fin_p), lambda j: (j, 0)),  # weight col tile
                pl.BlockSpec((1, tn), lambda j: (0, j)),      # gamma tile
                pl.BlockSpec((1, tn), lambda j: (0, j)),      # beta tile
            ],
            out_specs=pl.BlockSpec((B, tn), lambda j: (0, j)),
        ),
        compiler_params=pltpu.CompilerParams(
            dimension_semantics=("parallel",),  # shard Fout tiles across TCs (v7x)
        ),
    )(x_p, w_p, g_p, b_p)

    return out[:, :Fout]


def dense_block_ref(x, weight, bias, gamma, beta):
    y = x @ weight.T + bias
    mean = jnp.mean(y, axis=0, keepdims=True)
    var = jnp.mean((y - mean) ** 2, axis=0, keepdims=True)
    y = (y - mean) / jnp.sqrt(var + EPS)
    y = y * gamma + beta
    return jnp.maximum(y, 0.0)


if __name__ == "__main__":
    key = jax.random.PRNGKey(0)
    B, Fin, Fout = 8, 32, 64

    kx, kw, kb, kg, kbe = jax.random.split(key, 5)
    x = jax.random.normal(kx, (B, Fin), dtype=jnp.float32)
    # nn.Linear init ~ U(-1/sqrt(Fin), 1/sqrt(Fin)); deterministic synthetic init.
    bound = 1.0 / (Fin ** 0.5)
    weight = jax.random.uniform(kw, (Fout, Fin), minval=-bound, maxval=bound,
                                dtype=jnp.float32)
    bias = jax.random.uniform(kb, (Fout,), minval=-bound, maxval=bound,
                              dtype=jnp.float32)
    # BatchNorm1d params: gamma init 1, beta init 0 (slightly perturbed so the
    # affine path is exercised but still deterministic).
    gamma = jnp.ones((Fout,), jnp.float32) + 0.01 * jax.random.normal(kg, (Fout,))
    beta = 0.01 * jax.random.normal(kbe, (Fout,))

    out = dense_block(x, weight, bias, gamma, beta)
    out = jax.block_until_ready(out)

    ref = dense_block_ref(x, weight, bias, gamma, beta)
    assert out.shape == (B, Fout)
    assert jnp.allclose(out, ref, atol=1e-4, rtol=1e-4), float(
        jnp.max(jnp.abs(out - ref)))

    print("KERNEL_OK")
</pallas_src>

<mosaic_0001>
module attributes {stable_mosaic.version = 11 : i64} {
  func.func @dense_block_kernel(%arg0: i32, %arg1: memref<8x128xf32, #tpu.memory_space<vmem>>, %arg2: memref<128x128xf32, #tpu.memory_space<vmem>>, %arg3: memref<1x128xf32, #tpu.memory_space<vmem>>, %arg4: memref<1x128xf32, #tpu.memory_space<vmem>>, %arg5: memref<8x128xf32, #tpu.memory_space<vmem>>) attributes {dimension_semantics = [#tpu.dimension_semantics<parallel>], iteration_bounds = array<i64: 1>, scalar_prefetch = 0 : i64, scratch_operands = 0 : i64, tpu.core_type = #tpu.core_type<tc>, window_params = [{pipeline_mode = #tpu.pipeline_mode<synchronous>, transform_indices = @transform_0, window_bounds = array<i64: 8, 128>}, {transform_indices = @transform_1, window_bounds = array<i64: 128, 128>}, {transform_indices = @transform_2, window_bounds = array<i64: 1, 128>}, {transform_indices = @transform_3, window_bounds = array<i64: 1, 128>}, {transform_indices = @transform_4, window_bounds = array<i64: 8, 128>}]} {
    %c0 = arith.constant 0 : index
    %c0_0 = arith.constant 0 : index
    %0 = vector.load %arg1[%c0, %c0_0] : memref<8x128xf32, #tpu.memory_space<vmem>>, vector<8x128xf32>
    %c0_1 = arith.constant 0 : index
    %c0_2 = arith.constant 0 : index
    %1 = vector.load %arg2[%c0_1, %c0_2] : memref<128x128xf32, #tpu.memory_space<vmem>>, vector<128x128xf32>
    %cst = arith.constant dense<0.000000e+00> : vector<8x128xf32>
    %2 = tpu.matmul %0, %1, %cst {dimension_numbers = #tpu.dot_dimension_numbers<[1], [1], [0], [0], [0, 0, 1, 0], [], []>} : vector<8x128xf32>, vector<128x128xf32>, vector<8x128xf32> -> vector<8x128xf32>
    %cst_3 = arith.constant dense<0.000000e+00> : vector<128xf32>
    %3 = vector.multi_reduction <add>, %2, %cst_3 [0] : vector<8x128xf32> to vector<128xf32>
    %4 = vector.shape_cast %3 : vector<128xf32> to vector<1x128xf32>
    %cst_4 = arith.constant 8.000000e+00 : f32
    %5 = vector.broadcast %cst_4 : f32 to vector<1x128xf32>
    %6 = arith.divf %4, %5 : vector<1x128xf32>
    %7 = vector.broadcast %6 : vector<1x128xf32> to vector<8x128xf32>
    %8 = arith.subf %2, %7 : vector<8x128xf32>
    %9 = arith.mulf %8, %8 : vector<8x128xf32>
    %cst_5 = arith.constant dense<0.000000e+00> : vector<128xf32>
    %10 = vector.multi_reduction <add>, %9, %cst_5 [0] : vector<8x128xf32> to vector<128xf32>
    %11 = vector.shape_cast %10 : vector<128xf32> to vector<1x128xf32>
    %cst_6 = arith.constant 8.000000e+00 : f32
    %12 = vector.broadcast %cst_6 : f32 to vector<1x128xf32>
    %13 = arith.divf %11, %12 : vector<1x128xf32>
    %c0_7 = arith.constant 0 : index
    %c0_8 = arith.constant 0 : index
    %14 = vector.load %arg3[%c0_7, %c0_8] : memref<1x128xf32, #tpu.memory_space<vmem>>, vector<1x128xf32>
    %cst_9 = arith.constant 9.99999974E-6 : f32
    %15 = vector.broadcast %cst_9 : f32 to vector<1x128xf32>
    %16 = arith.addf %13, %15 : vector<1x128xf32>
    %17 = math.rsqrt %16 : vector<1x128xf32>
    %18 = arith.mulf %14, %17 : vector<1x128xf32>
    %19 = vector.broadcast %18 : vector<1x128xf32> to vector<8x128xf32>
    %20 = arith.mulf %8, %19 : vector<8x128xf32>
    %c0_10 = arith.constant 0 : index
    %c0_11 = arith.constant 0 : index
    %21 = vector.load %arg4[%c0_10, %c0_11] : memref<1x128xf32, #tpu.memory_space<vmem>>, vector<1x128xf32>
    %22 = vector.broadcast %21 : vector<1x128xf32> to vector<8x128xf32>
    %23 = arith.addf %20, %22 : vector<8x128xf32>
    %cst_12 = arith.constant 0.000000e+00 : f32
    %24 = vector.broadcast %cst_12 : f32 to vector<8x128xf32>
    %25 = arith.maximumf %23, %24 : vector<8x128xf32>
    %c0_13 = arith.constant 0 : index
    %c0_14 = arith.constant 0 : index
    %26 = vector.load %arg5[%c0_13, %c0_14] : memref<8x128xf32, #tpu.memory_space<vmem>>, vector<8x128xf32>
    tpu.vector_store %arg5[%c0_13, %c0_14], %25 {strides = array<i32>} : memref<8x128xf32, #tpu.memory_space<vmem>>, vector<8x128xf32>,
    return
  }
  func.func @transform_0(%arg0: i32) -> (i32, i32) {
    %c0_i32 = arith.constant 0 : i32
    %c0_i32_0 = arith.constant 0 : i32
    %c0_i32_1 = arith.constant 0 : i32
    return %c0_i32, %c0_i32_0 : i32, i32
  }
  func.func @transform_1(%arg0: i32) -> (i32, i32) {
    %c0_i32 = arith.constant 0 : i32
    %c0_i32_0 = arith.constant 0 : i32
    return %arg0, %c0_i32 : i32, i32
  }
  func.func @transform_2(%arg0: i32) -> (i32, i32) {
    %c0_i32 = arith.constant 0 : i32
    %c0_i32_0 = arith.constant 0 : i32
    return %c0_i32, %arg0 : i32, i32
  }
  func.func @transform_3(%arg0: i32) -> (i32, i32) {
    %c0_i32 = arith.constant 0 : i32
    %c0_i32_0 = arith.constant 0 : i32
    return %c0_i32, %arg0 : i32, i32
  }
  func.func @transform_4(%arg0: i32) -> (i32, i32) {
    %c0_i32 = arith.constant 0 : i32
    %c0_i32_0 = arith.constant 0 : i32
    return %c0_i32, %arg0 : i32, i32
  }
}

</mosaic_0001>

<bundles_post_ra>
// kernel: dense_block.1
= control target key start
LH: loop header
LB: loop body
LE: loop exit
PB: predicated region body
PF: predicated region fallthrough
CT: control target
= control target key end

     0   :  { %v264_v2 = vmov 0.0|0.0   ;;  %vm265_vm0 = vmmov 0   ;;  %v266_v4 = vmov 0.0   ;;  %s362_s0 = inlined_call_operand.vmem [shape: f32[8,128], index: 0, kind: input, shape index: {}]   ;;  %s363_s1 = inlined_call_operand.vmem [shape: f32[128,128], index: 1, kind: input, shape index: {}]   ;;  %s364_s2 = inlined_call_operand.vmem [shape: f32[1,128], index: 2, kind: input, shape index: {}]   ;;  %s365_s3 = inlined_call_operand.vmem [shape: f32[1,128], index: 3, kind: input, shape index: {}]   ;;  %s366_s4 = inlined_call_operand.hbm [shape: f32[8,128], index: 4, kind: output, shape index: {}]  }
   0x1   :  { %v19_v0 = vld [vmem:[%s363_s1] sm:$0xff]  ;;  %v20_v1 = vld [vmem:[%s363_s1 + $0x8] sm:$0xff]  ;;  %210 = vmatprep.subr.bf16.mxu0 %v264_v2  ;;  %207 = vmatprep.mubr.msk.f32.mxu0 %vm265_vm0, %v266_v4  ;;  %v21_v5 = vld [vmem:[%s363_s1 + $0x10] sm:$0xff] }
   0x2   :  { %v211_v3 = vpack.c.bf16 %v20_v1, %v19_v0  ;;  %v22_v6 = vld [vmem:[%s363_s1 + $0x18] sm:$0xff] }
   0x4   :  { %212 = vmatpush3.bf16.xpose.msra.mxu0 %v211_v3 }
   0x5   :  { %213 = vmatprep.subr.bf16.mxu0 %v264_v2 }
   0x6   :  { %9 = vsyncpa [#allocation3], 0  ;;  %v214_v7 = vpack.c.bf16 %v22_v6, %v21_v5  ;;  %v23_v8 = vld [vmem:[%s363_s1 + $0x20] sm:$0xff]  ;;  %v24_v9 = vld [vmem:[%s363_s1 + $0x28] sm:$0xff]  ;;  %v127_v46 = vlaneseq  ;;  %s267_s25 = smov [#allocation2]  }
   0x7   :  { %v217_v10 = vpack.c.bf16 %v24_v9, %v23_v8  ;;  %v25_v11 = vld [vmem:[%s363_s1 + $0x30] sm:$0xff]  ;;  %v26_v12 = vld [vmem:[%s363_s1 + $0x38] sm:$0xff]  ;;  %v27_v14 = vld [vmem:[%s363_s1 + $0x40] sm:$0xff]  ;;  %s149_s26 = sshll.u32 %s267_s25, 4  ;;  %s150_s26 = int_to_ptr.vmem [resolvable:$true] %s149_s26 }
   0x8   :  { %v220_v13 = vpack.c.bf16 %v26_v12, %v25_v11  ;;  %v28_v15 = vld [vmem:[%s363_s1 + $0x48] sm:$0xff]  ;;  %v29_v17 = vld [vmem:[%s363_s1 + $0x50] sm:$0xff]  ;;  %v30_v18 = vld [vmem:[%s363_s1 + $0x58] sm:$0xff]  ;;  %v128_v47 = vshrl.u32 %v127_v46, 7  ;;  %s240_s27 = scalar_lea.vmem %s150_s26, 128  ;;  %p245_p1 = scmp.lt.s32.totalorder %s150_s26, %s150_s26 }
   0x9   :  { %v223_v16 = vpack.c.bf16 %v28_v15, %v27_v14  ;;  %v226_v19 = vpack.c.bf16 %v30_v18, %v29_v17  ;;  %v31_v20 = vld [vmem:[%s363_s1 + $0x60] sm:$0xff]  ;;  %v32_v21 = vld [vmem:[%s363_s1 + $0x68] sm:$0xff]  ;;  %v33_v23 = vld [vmem:[%s363_s1 + $0x70] sm:$0xff]  ;;  %p241_p0 = scmp.ne.s32.totalorder %s150_s26, %s240_s27  ;;  %p246_p2 = scmp.lt.s32.totalorder %s240_s27, %s240_s27 }
   0xa   :  { %v229_v22 = vpack.c.bf16 %v32_v21, %v31_v20  ;;  %v34_v24 = vld [vmem:[%s363_s1 + $0x78] sm:$0xff]  ;;  %v18_v26 = vld [vmem:[%s362_s0] sm:$0xff]  ;;  %v129_v49 = vsub.s32 0, %v128_v47 }
   0xb   :  { %v232_v25 = vpack.c.bf16 %v34_v24, %v33_v23  ;;  %v122_v48 = vld [vmem:[%s364_s2] sm:$0x1]  ;;  %p247_p3 = por %p246_p2, %p245_p1 }
   0xc   :  { %215 = vmatpush3.bf16.xpose.msra.mxu0 %v214_v7  ;;  %v157_v53 = vld [vmem:[%s365_s3] ss:$0 sm:$0xff] }
   0xd   :  { %216 = vmatprep.subr.bf16.mxu0 %v264_v2  ;;  %p248_p4 = pnand %p247_p3, %p241_p0 }
  0x14   :  { %218 = vmatpush3.bf16.xpose.msra.mxu0 %v217_v10 }
  0x15   :  { %219 = vmatprep.subr.bf16.mxu0 %v264_v2 }
  0x1c   :  { %221 = vmatpush3.bf16.xpose.msra.mxu0 %v220_v13 }
  0x1d   :  { %222 = vmatprep.subr.bf16.mxu0 %v264_v2 }
  0x24   :  { %224 = vmatpush3.bf16.xpose.msra.mxu0 %v223_v16 }
  0x25   :  { %225 = vmatprep.subr.bf16.mxu0 %v264_v2 }
  0x2c   :  { %227 = vmatpush3.bf16.xpose.msra.mxu0 %v226_v19 }
  0x2d   :  { %228 = vmatprep.subr.bf16.mxu0 %v264_v2 }
  0x34   :  { %230 = vmatpush3.bf16.xpose.msra.mxu0 %v229_v22 }
  0x35   :  { %231 = vmatprep.subr.bf16.mxu0 %v264_v2 }
  0x3c   :  { %233 = vmatpush3.bf16.xpose.msra.mxu0 %v232_v25 }
  0x43   :  { %208 = vmatmul.mubr.f32.vlgmr.msra.gmra.mrb[0].mxu0 %v18_v26 }
 0x116   :  { %v101_v27 = vpop.f32.mrb[0].mxu0 }
 0x117   :  { %v105_v28 = vrot.slane %v101_v27, 4  ;;  %v209_v29 = vpop.f32.mrb[1].mxu0 }
 0x119   :  { %v106_v30 = vadd.f32 %v105_v28, %v101_v27 }
 0x11b   :  { %v107_v31 = vrot.slane %v106_v30, 2 }
 0x11d   :  { %v108_v32 = vadd.f32 %v107_v31, %v106_v30 }
 0x11f   :  { %v109_v33 = vrot.slane %v108_v32, 1 }
 0x121   :  { %v110_v34 = vadd.f32 %v109_v33, %v108_v32 }
 0x123   :  { %v112_v35 = vmul.f32 0.125, %v110_v34 }
 0x125   :  { %v113_v36 = vsub.f32 %v101_v27, %v112_v35 }
 0x127   :  { %v114_v37 = vmul.f32 %v113_v36, %v113_v36 }
 0x129   :  { %v115_v38 = vrot.slane %v114_v37, 4 }
 0x12b   :  { %v116_v39 = vadd.f32 %v115_v38, %v114_v37 }
 0x12d   :  { %v117_v40 = vrot.slane %v116_v39, 2 }
 0x12f   :  { %v118_v41 = vadd.f32 %v117_v40, %v116_v39 }
 0x131   :  { %v119_v42 = vrot.slane %v118_v41, 1 }
 0x133   :  { %v120_v43 = vadd.f32 %v119_v42, %v118_v41 }
 0x135   :  { %v121_v44 = vmul.f32 0.125, %v120_v43 }
 0x137   :  { %v123_v45 = vadd.f32 1e-05, %v121_v44 }
 0x139   :  { %238 = vrsqrt.f32 %v123_v45 }
 0x143   :  { %v239_v50 = vpop.eup %238 }
 0x144   :  { %v125_v51 = vmul.f32 %v239_v50, %v122_v48 }
 0x146   :  { %v130_v52 = vrot.slane %v125_v51, %v129_v49 }
 0x148   :  { %v132_v54 = vmul.f32 %v130_v52, %v113_v36 }
 0x14a   :  { %v140_v55 = vadd.f32 %v157_v53, %v132_v54 }
 0x14c   :  { %v141_v56 = vmax.f32 %v140_v55, 0.0 }
 0x14e   :  { %142 = vst [vmem:[#allocation2] sm:$0xff] %v141_v56 }
 0x14f   :  { %251 = shalt.err (!%p248_p4)
}
 0x150   :  { %s252_s29 = scalar_lea.hbm %s366_s4, 128 }
 0x151   :  { %p253_p5 = scmp.ne.s32.totalorder %s366_s4, %s252_s29  ;;  %p256_p6 = scmp.lt.u32.totalorder %s252_s29, %s366_s4 }
 0x153   :  { %p258_p7 = pnand %p256_p6, %p253_p5 }
 0x155   :  { %261 = shalt.err (!%p258_p7)
}
 0x156   :  { %152 = dma.vmem_to_hbm [thread:$0]  %s150_s26, 128, %s366_s4, [#allocation3]  }
 0x157   :  { %262 = dma.done.wait [#allocation3], 128  }
 0x158   :  { %263 = vsyncadd [#allocation3], 4294967168 }
 0x159   :  { %156 = vsyncpa [#allocation3], 1 }

</bundles_post_ra>
